<compile_context>
chip_gen: v6e
topology: v6e:2x2x1
jax: 0.10.0
libtpu: 0.0.40
codegen_flags: <defaults>
</compile_context>

<pallas_src>
import math

import jax
import jax.numpy as jnp
from jax.experimental import pallas as pl
from jax.experimental.pallas import tpu as pltpu


def _round_up(v: int, m: int) -> int:
    return ((v + m - 1) // m) * m


def _cdiv(a: int, b: int) -> int:
    return -(-a // b)


def _padded_vmem_bytes(rows: int, cols: int, itemsize: int) -> int:
    """VMEM footprint of one (rows, cols) buffer: sublane pad to 8, lane pad to 128."""
    return _round_up(max(rows, 1), 8) * _round_up(max(cols, 1), 128) * itemsize


def _num_tensorcores() -> int:
    """2 TensorCores per chip on v7x-class devices, otherwise 1 (v5e/v6e)."""
    try:
        kind = (getattr(jax.devices()[0], "device_kind", "") or "").lower()
        if "v7" in kind:
            return 2
    except Exception:
        pass
    return 1


def _make_kernel(tile_rows: int, k: int, row_width: int, resident_x: bool):
    def kernel(x_ref, const_ref, out_ref):
        # x_ref:     (rows_pad, k) resident  or  (tile_rows, k) streamed
        # const_ref: (3, row_width) resident: [2*pi*l | phase offset | packed-slot id]
        # out_ref:   (tile_rows, row_width) current lane-dense output tile
        if resident_x:
            i = pl.program_id(0)
            row0 = pl.multiple_of(i * tile_rows, tile_rows)
            x_tile = x_ref[pl.ds(row0, tile_rows), :]
        else:
            x_tile = x_ref[...]
        x_tile = x_tile.astype(jnp.float32)              # (tile_rows, k)

        freqs = const_ref[0:1, :]                        # (1, row_width) 2*pi*l per lane
        offs = const_ref[1:2, :]                         # (1, row_width) 0 (cos) / -pi/2 (sin)

        # Per-lane select of the packed timestep this lane belongs to.
        # k <= 8 -> at most 7 VPU selects + k XLU lane-broadcasts per tile,
        # cheap next to the full-width transcendental + DMA writeback.
        if k == 1:
            x_sel = x_tile                               # (tile_rows, 1); broadcasts below
        else:
            blk = const_ref[2:3, :]                      # (1, row_width) slot id as f32
            x_sel = jnp.broadcast_to(x_tile[:, 0:1], (tile_rows, row_width))
            for j in range(1, k):
                x_sel = jnp.where(blk == float(j), x_tile[:, j:j + 1], x_sel)

        # sin(theta) == cos(theta - pi/2): one full-width transcendental and one
        # unmasked full-width store instead of per-half masked sub-vreg stores.
        # TODO(synk): if a v7x bundle dump shows the EUP/VALU slot binding, build the
        # higher harmonics with the angle-addition recurrence (pure VPU mul/add).
        phase = x_sel * freqs + offs
        out_ref[...] = jnp.cos(phase).astype(out_ref.dtype)

    return kernel


def positional_encoding(x: jax.Array, num_channels: int, *,
                        tile_rows: int | None = None,
                        out_dtype=None,
                        resident_x: bool | None = None) -> jax.Array:
    """x: 1-D (N,). Returns (N, num_channels) = [cos(outer(x, f)) | sin(outer(x, f))],
    f = arange(num_channels//2) * 2*pi.

    The kernel is HBM-write bound: pass out_dtype=jnp.bfloat16 whenever downstream
    accepts it to roughly halve wall-clock on v5e/v6e (and help v7x too).
    """
    assert x.ndim == 1, "torch.outer requires a 1-D input vector"
    assert num_channels % 2 == 0 and num_channels >= 2, "num_channels must be even"
    n = int(x.shape[0])
    half = num_channels // 2

    # Keep a floating output dtype (cos/sin of integer timesteps must stay float).
    if out_dtype is None:
        out_dtype = x.dtype if jnp.issubdtype(x.dtype, jnp.floating) else jnp.float32
    out_dtype = jnp.dtype(out_dtype)

    if n == 0:
        return jnp.zeros((0, num_channels), out_dtype)

    # ---- lane packing: k consecutive timesteps per stored row so the stored row
    # width k*C is a multiple of 128 lanes (unmasked full-width HBM stores). ----
    k = 128 // math.gcd(num_channels, 128)
    if k > 8:            # pathological tiny C: per-lane select cost would dominate
        k = 1
    row_width = k * num_channels
    rows = _cdiv(n, k)

    # ---- row tile: ~4 MiB per output block (8 MiB double-buffered) ----
    if tile_rows is None:
        tile_rows = (4 << 20) // max(1, row_width * out_dtype.itemsize)
    tile_rows = int(tile_rows)
    if rows <= 8:
        tile_rows = rows                                  # single full-extent block
    else:
        tile_rows = max(8, min(tile_rows, _round_up(rows, 8)))
        # Split only when a 2nd TensorCore exists (v7x megacore); on single-TC
        # v5e/v6e the biggest possible block per grid step wins.
        if _num_tensorcores() >= 2 and rows >= 1024:
            tile_rows = min(tile_rows, _round_up(_cdiv(rows, 2), 8))
        tile_rows = max(8, (tile_rows // 8) * 8)          # (8,128) sublane rule

    grid = _cdiv(rows, tile_rows)
    rows_pad = grid * tile_rows
    n_pad = rows_pad * k

    x_pad = x if n_pad == n else jnp.pad(x, (0, n_pad - n))
    x2 = x_pad.reshape(rows_pad, k)

    # ---- x residency: the (rows, k) VMEM buffer is lane-padded to 128 lanes, so its
    # real footprint is rows*128*itemsize (NOT rows*k*itemsize).  Keep x fully
    # resident only while that stays <= 4 MiB; otherwise stream per-tile blocks. ----
    if resident_x is None:
        resident_x = _padded_vmem_bytes(rows_pad, k, x2.dtype.itemsize) <= (4 << 20)
    if resident_x:
        x_spec = pl.BlockSpec((rows_pad, k), lambda i: (0, 0))
        x_block_rows = rows_pad
    else:
        x_spec = pl.BlockSpec((tile_rows, k), lambda i: (i, 0))
        x_block_rows = tile_rows

    # ---- host-precomputed per-lane constants (tiny, VMEM-resident) ----
    p = jnp.arange(row_width, dtype=jnp.int32)
    r = p % num_channels
    is_sin = r >= half
    l = jnp.where(is_sin, r - half, r).astype(jnp.float32)
    consts = jnp.stack([
        l * jnp.float32(2.0 * math.pi),                                     # 2*pi*l
        jnp.where(is_sin, jnp.float32(-math.pi / 2.0), jnp.float32(0.0)),   # phase offset
        (p // num_channels).astype(jnp.float32),                            # packed-slot id
    ], axis=0)                                                              # (3, row_width)

    kernel = _make_kernel(tile_rows, k, row_width, resident_x)

    # ---- VMEM budget (everything counted double-buffered) + explicit limit so the
    # same tile plan compiles on v7x (64 MiB physical / 32 MiB default scoped). ----
    out_block = _padded_vmem_bytes(tile_rows, row_width, out_dtype.itemsize)
    x_block = _padded_vmem_bytes(x_block_rows, k, x2.dtype.itemsize)
    const_block = _padded_vmem_bytes(3, row_width, 4)
    vmem_needed = 2 * (out_block + x_block + const_block) + (2 << 20)
    vmem_limit = int(min(max(vmem_needed, 32 << 20), 64 << 20))

    out = pl.pallas_call(
        kernel,
        out_shape=jax.ShapeDtypeStruct((rows_pad, row_width), out_dtype),
        grid_spec=pltpu.PrefetchScalarGridSpec(
            num_scalar_prefetch=0,
            grid=(grid,),
            in_specs=[
                x_spec,
                pl.BlockSpec((3, row_width), lambda i: (0, 0)),   # resident constants
            ],
            out_specs=pl.BlockSpec((tile_rows, row_width), lambda i: (i, 0)),
        ),
        compiler_params=pltpu.CompilerParams(
            dimension_semantics=("parallel",),
            vmem_limit_bytes=vmem_limit,
        ),
    )(x2, consts)

    # (rows_pad, k*C) -> (rows_pad*k, C) is a free row-major view; drop padding.
    out = out.reshape(rows_pad * k, num_channels)
    if n_pad != n:
        out = out[:n]
    return out


def positional_encoding_ref(x: jax.Array, num_channels: int) -> jax.Array:
    """Pure-JAX reference (mirrors the PyTorch forward)."""
    freqs = jnp.arange(num_channels // 2, dtype=jnp.float32) * jnp.float32(2.0 * jnp.pi)
    y = jnp.outer(x, freqs.astype(x.dtype))
    return jnp.concatenate([jnp.cos(y), jnp.sin(y)], axis=1)


if __name__ == "__main__":
    key = jax.random.PRNGKey(0)

    # (N, C, x-scale, kwargs, atol): exercise k=4/k=2/k=1 packing, the generalized
    # packing path (C=96), padded tails, the streamed-x path, and bf16 output.
    cases = [
        (16, 32, 1.0, {}, 5e-4),                              # k=4 packing, single block
        (300, 64, 1.0, {}, 5e-4),                             # k=2 packing, padded tail
        (40, 256, 0.05, {}, 5e-4),                            # k=1, row_width=256
        (257, 96, 1.0, {}, 5e-4),                             # generalized packing: k=4, width 384
        (100, 64, 1.0, {"resident_x": False}, 5e-4),          # streamed-x path
        (64, 128, 1.0, {"out_dtype": jnp.bfloat16}, 2e-2),    # bf16 output (halved writes)
    ]

    for idx, (N, C, scale, kw, atol) in enumerate(cases):
        k_sub = jax.random.fold_in(key, idx)
        x = jax.random.uniform(k_sub, (N,), dtype=jnp.float32) * scale

        out = jax.block_until_ready(positional_encoding(x, C, **kw))
        ref = positional_encoding_ref(x, C)

        assert out.shape == (N, C), (out.shape, (N, C))
        if "out_dtype" not in kw:
            assert out.dtype == ref.dtype
        assert jnp.allclose(out.astype(jnp.float32), ref, atol=atol, rtol=atol), \
            f"mismatch vs reference for N={N}, C={C}"

    print("KERNEL_OK")
</pallas_src>

<mosaic_0001>
module attributes {stable_mosaic.version = 11 : i64} {
  func.func @kernel(%arg0: i32, %arg1: memref<4x4xf32, #tpu.memory_space<vmem>>, %arg2: memref<3x128xf32, #tpu.memory_space<vmem>>, %arg3: memref<4x128xf32, #tpu.memory_space<vmem>>) attributes {dimension_semantics = [#tpu.dimension_semantics<parallel>], iteration_bounds = array<i64: 1>, scalar_prefetch = 0 : i64, scratch_operands = 0 : i64, tpu.core_type = #tpu.core_type<tc>, window_params = [{pipeline_mode = #tpu.pipeline_mode<synchronous>, transform_indices = @transform_0, window_bounds = array<i64: 4, 4>}, {pipeline_mode = #tpu.pipeline_mode<synchronous>, transform_indices = @transform_1, window_bounds = array<i64: 3, 128>}, {transform_indices = @transform_2, window_bounds = array<i64: 4, 128>}]} {
    %c4_i32 = arith.constant 4 : i32
    %0 = arith.muli %arg0, %c4_i32 : i32
    %1 = tpu.assume_multiple %0, 4 : i32
    %2 = arith.index_cast %1 : i32 to index
    %c0 = arith.constant 0 : index
    %3 = vector.load %arg1[%2, %c0] : memref<4x4xf32, #tpu.memory_space<vmem>>, vector<4x4xf32>
    %c0_0 = arith.constant 0 : index
    %c0_1 = arith.constant 0 : index
    %4 = vector.load %arg2[%c0_0, %c0_1] : memref<3x128xf32, #tpu.memory_space<vmem>>, vector<1x128xf32>
    %c1 = arith.constant 1 : index
    %c0_2 = arith.constant 0 : index
    %5 = vector.load %arg2[%c1, %c0_2] : memref<3x128xf32, #tpu.memory_space<vmem>>, vector<1x128xf32>
    %c2 = arith.constant 2 : index
    %c0_3 = arith.constant 0 : index
    %6 = vector.load %arg2[%c2, %c0_3] : memref<3x128xf32, #tpu.memory_space<vmem>>, vector<1x128xf32>
    %7 = vector.extract_strided_slice %3 {offsets = [0, 0], sizes = [4, 1], strides = [1, 1]} : vector<4x4xf32> to vector<4x1xf32>
    %8 = vector.shape_cast %7 : vector<4x1xf32> to vector<4x1xf32>
    %9 = vector.broadcast %8 : vector<4x1xf32> to vector<4x128xf32>
    %cst = arith.constant 1.000000e+00 : f32
    %10 = vector.broadcast %cst : f32 to vector<1x128xf32>
    %11 = arith.cmpf oeq, %6, %10 : vector<1x128xf32>
    %12 = vector.extract_strided_slice %3 {offsets = [0, 1], sizes = [4, 1], strides = [1, 1]} : vector<4x4xf32> to vector<4x1xf32>
    %13 = vector.shape_cast %11 : vector<1x128xi1> to vector<1x128xi1>
    %14 = vector.broadcast %13 : vector<1x128xi1> to vector<4x128xi1>
    %15 = vector.shape_cast %12 : vector<4x1xf32> to vector<4x1xf32>
    %16 = vector.broadcast %15 : vector<4x1xf32> to vector<4x128xf32>
    %17 = arith.select %14, %16, %9 : vector<4x128xi1>, vector<4x128xf32>
    %cst_4 = arith.constant 2.000000e+00 : f32
    %18 = vector.broadcast %cst_4 : f32 to vector<1x128xf32>
    %19 = arith.cmpf oeq, %6, %18 : vector<1x128xf32>
    %20 = vector.extract_strided_slice %3 {offsets = [0, 2], sizes = [4, 1], strides = [1, 1]} : vector<4x4xf32> to vector<4x1xf32>
    %21 = vector.shape_cast %19 : vector<1x128xi1> to vector<1x128xi1>
    %22 = vector.broadcast %21 : vector<1x128xi1> to vector<4x128xi1>
    %23 = vector.shape_cast %20 : vector<4x1xf32> to vector<4x1xf32>
    %24 = vector.broadcast %23 : vector<4x1xf32> to vector<4x128xf32>
    %25 = arith.select %22, %24, %17 : vector<4x128xi1>, vector<4x128xf32>
    %cst_5 = arith.constant 3.000000e+00 : f32
    %26 = vector.broadcast %cst_5 : f32 to vector<1x128xf32>
    %27 = arith.cmpf oeq, %6, %26 : vector<1x128xf32>
    %28 = vector.extract_strided_slice %3 {offsets = [0, 3], sizes = [4, 1], strides = [1, 1]} : vector<4x4xf32> to vector<4x1xf32>
    %29 = vector.shape_cast %27 : vector<1x128xi1> to vector<1x128xi1>
    %30 = vector.broadcast %29 : vector<1x128xi1> to vector<4x128xi1>
    %31 = vector.shape_cast %28 : vector<4x1xf32> to vector<4x1xf32>
    %32 = vector.broadcast %31 : vector<4x1xf32> to vector<4x128xf32>
    %33 = arith.select %30, %32, %25 : vector<4x128xi1>, vector<4x128xf32>
    %34 = vector.broadcast %4 : vector<1x128xf32> to vector<4x128xf32>
    %35 = arith.mulf %33, %34 : vector<4x128xf32>
    %36 = vector.broadcast %5 : vector<1x128xf32> to vector<4x128xf32>
    %37 = arith.addf %35, %36 : vector<4x128xf32>
    %38 = math.cos %37 : vector<4x128xf32>
    %c0_6 = arith.constant 0 : index
    %c0_7 = arith.constant 0 : index
    %39 = vector.load %arg3[%c0_6, %c0_7] : memref<4x128xf32, #tpu.memory_space<vmem>>, vector<4x128xf32>
    tpu.vector_store %arg3[%c0_6, %c0_7], %38 {strides = array<i32>} : memref<4x128xf32, #tpu.memory_space<vmem>>, vector<4x128xf32>,
    return
  }
  func.func @transform_0(%arg0: i32) -> (i32, i32) {
    %c0_i32 = arith.constant 0 : i32
    %c0_i32_0 = arith.constant 0 : i32
    %c0_i32_1 = arith.constant 0 : i32
    return %c0_i32, %c0_i32_0 : i32, i32
  }
  func.func @transform_1(%arg0: i32) -> (i32, i32) {
    %c0_i32 = arith.constant 0 : i32
    %c0_i32_0 = arith.constant 0 : i32
    %c0_i32_1 = arith.constant 0 : i32
    return %c0_i32, %c0_i32_0 : i32, i32
  }
  func.func @transform_2(%arg0: i32) -> (i32, i32) {
    %c0_i32 = arith.constant 0 : i32
    %c0_i32_0 = arith.constant 0 : i32
    return %arg0, %c0_i32 : i32, i32
  }
}

</mosaic_0001>

<bundles_post_ra>
// kernel: tpu_custom_call.1
= control target key start
LH: loop header
LB: loop body
LE: loop exit
PB: predicated region body
PF: predicated region fallthrough
CT: control target
= control target key end

     0   :  { %7 = vsyncpa [#allocation3], 0  ;;  %s369_s0 = inlined_call_operand.hbm [shape: f32[4,4], index: 0, kind: input, shape index: {}]   ;;  %s370_s1 = inlined_call_operand.hbm [shape: f32[3,128], index: 1, kind: input, shape index: {}]   ;;  %s371_s2 = inlined_call_operand.hbm [shape: f32[4,128], index: 2, kind: output, shape index: {}]  }
   0x1   :  { %8 = vsyncpa [#allocation6], 0 }
   0x2   :  { %9 = vsyncpa [#allocation4], 0  ;;  %s311_s9 = smov [#allocation2]   ;;  %s312_s11 = smov [#allocation5]  }
   0x3   :  { %s16_s10 = sshll.u32 %s311_s9, 4  ;;  %s26_s12 = sshll.u32 %s312_s11, 4  ;;  %s17_s10 = int_to_ptr.vmem [resolvable:$true] %s16_s10  ;;  %s27_s12 = int_to_ptr.vmem [resolvable:$true] %s26_s12 }
   0x4   :  { %s253_s13 = scalar_lea.vmem %s17_s10, 64  ;;  %p258_p1 = scmp.lt.s32.totalorder %s17_s10, %s17_s10 }
   0x5   :  { %p254_p0 = scmp.ne.s32.totalorder %s17_s10, %s253_s13  ;;  %p259_p2 = scmp.lt.s32.totalorder %s253_s13, %s253_s13 }
   0x7   :  { %p260_p3 = por %p259_p2, %p258_p1 }
   0x9   :  { %p261_p4 = pnand %p260_p3, %p254_p0 }
   0xb   :  { %264 = shalt.err (!%p261_p4)
}
   0xc   :  { %19 = dma.hbm_to_vmem [thread:$0]  %s369_s0, 64, %s17_s10, [#allocation3]  }
   0xd   :  { %s273_s16 = scalar_lea.vmem %s27_s12, 64  ;;  %p278_p6 = scmp.lt.s32.totalorder %s27_s12, %s27_s12 }
   0xe   :  { %p274_p5 = scmp.ne.s32.totalorder %s27_s12, %s273_s16  ;;  %p279_p7 = scmp.lt.s32.totalorder %s273_s16, %s273_s16 }
  0x10   :  { %p280_p8 = por %p279_p7, %p278_p6 }
  0x12   :  { %p281_p9 = pnand %p280_p8, %p274_p5 }
  0x14   :  { %284 = shalt.err (!%p281_p9)
}
  0x15   :  { %29 = dma.hbm_to_vmem [thread:$0]  %s370_s1, 64, %s27_s12, [#allocation6]  }
  0x16   :  { %305 = dma.done.wait [#allocation3], 64  }
  0x17   :  { %306 = vsyncadd [#allocation3], 4294967232 }
  0x18   :  { %307 = dma.done.wait [#allocation6], 64  }
  0x19   :  { %308 = vsyncadd [#allocation6], 4294967232  ;;  %v313_v0 = vmov 0   ;;  %v314_v1 = vmov 2   ;;  %v38_v2 = vld [vmem:[#allocation2] sm:$0xf]  ;;  %v49_v5 = vlaneseq }
  0x1a   :  { %236 = vset.pattern.permute.xlu0 %v313_v0  ;;  %238 = vset.pattern.permute.xlu1 %v314_v1  ;;  %v315_v3 = vmov 1   ;;  %v316_v4 = vmov 3   ;;  %v41_v6 = vld [vmem:[#allocation5 + $0x2] sm:$0x1]  ;;  %v213_v20 = vld [vmem:[#allocation5] ss:$0 sm:$0xff] }
  0x1b   :  { %44 = vperm.xlu0 %236, %v38_v2   ;;  %67 = vperm.xlu1 %238, %v38_v2   ;;  %v50_v7 = vshrl.u32 %v49_v5, 7  ;;  %vm47_vm0 = vcmp.eq.f32.partialorder %v41_v6, 1.0  ;;  %vm59_vm1 = vcmp.eq.f32.partialorder %v41_v6, 2.0  ;;  %vm71_vm2 = vcmp.eq.f32.partialorder %v41_v6, 3.0  ;;  %v214_v22 = vld [vmem:[#allocation5 + $0x1] ss:$0 sm:$0xff] }
  0x1c   :  { %v48_v9 = vsel %vm47_vm0, 1, %v313_v0  ;;  %v60_v10 = vsel %vm59_vm1, 1, %v313_v0  ;;  %v72_v11 = vsel %vm71_vm2, 1, %v313_v0  ;;  %v317_v36 = vmov 683565275   ;;  %s323_s0 = smov [#allocation7]  }
  0x1d   :  { %v51_v8 = vsub.s32 0, %v50_v7  ;;  %v318_v38 = vmov 2475754826   ;;  %v319_v41 = vmov 2131351028   ;;  %s203_s1 = sshll.u32 %s323_s0, 4  ;;  %s204_s1 = int_to_ptr.vmem [resolvable:$true] %s203_s1 }
  0x1e   :  { %v320_v44 = vmov 2102212464   ;;  %v321_v47 = vmov 920167782   ;;  %v322_v50 = vmov 1326507024   ;;  %p290_p11 = scmp.lt.s32.totalorder %s204_s1, %s204_s1 }
  0x1f   :  { %237 = vset.pattern.permute.xlu0 %v315_v3  ;;  %239 = vset.pattern.permute.xlu1 %v316_v4  ;;  %v52_v12 = vrot.slane %v48_v9, %v51_v8  ;;  %v64_v15 = vrot.slane %v60_v10, %v51_v8  ;;  %v76_v16 = vrot.slane %v72_v11, %v51_v8  ;;  %s285_s19 = scalar_lea.vmem %s204_s1, 64 }
  0x20   :  { %55 = vperm.xlu0 %237, %v38_v2   ;;  %79 = vperm.xlu1 %239, %v38_v2   ;;  %p286_p10 = scmp.ne.s32.totalorder %s204_s1, %s285_s19  ;;  %p291_p12 = scmp.lt.s32.totalorder %s285_s19, %s285_s19 }
  0x21   :  { %vm53_vm3 = vcmp.eq.s32.totalorder %v52_v12, 1  ;;  %vm65_vm4 = vcmp.eq.s32.totalorder %v64_v15, 1  ;;  %vm77_vm5 = vcmp.eq.s32.totalorder %v76_v16, 1 }
  0x22   :  { %p292_p13 = por %p291_p12, %p290_p11 }
  0x24   :  { %240 = vset.pattern.permute.xlu0 %v316_v4  ;;  %p293_p0 = pnand %p292_p13, %p286_p10 }
  0x96   :  { %v45_v13 = vpop.permute.xlu0 %44  ;;  %v68_v14 = vpop.permute.xlu1 %67 }
  0x9b   :  { %v56_v17 = vpop.permute.xlu0 %55  ;;  %v80_v18 = vpop.permute.xlu1 %79 }
  0x9c   :  { %v58_v19 = vsel %vm53_vm3, %v56_v17, %v45_v13 }
  0x9d   :  { %v70_v21 = vsel %vm65_vm4, %v68_v14, %v58_v19 }
  0x9e   :  { %v82_v23 = vsel %vm77_vm5, %v80_v18, %v70_v21 }
  0x9f   :  { %v87_v24 = vmul.f32 %v213_v20, %v82_v23 }
  0xa1   :  { %v345_v25 = vadd.f32 %v214_v22, %v87_v24 }
  0xa3   :  { %v96_v26 = vand.u32 2139095040, %v345_v25  ;;  %v93_v30 = vand.u32 2147483647, %v345_v25  ;;  %vm95_vm13 = vcmp.lt.s32.totalorder %v345_v25, 0  ;;  %vm185_vm2 = vweird.f32 %v345_v25 }
  0xa5   :  { %v97_v27 = vshrl.u32 %v96_v26, 23  ;;  %v100_v34 = vand.u32 8388607, %v93_v30  ;;  %vm94_vm14 = vcmp.le.f32.partialorder %v93_v30, 0.7853982 }
  0xa7   :  { %v215_v28 = vadd.s32 4294967169, %v97_v27  ;;  %v101_v52 = vor.u32 8388608, %v100_v34 }
  0xa9   :  { %v103_v29 = vadd.s32 1, %v215_v28  ;;  %v141_v2 = vshll.u32 %v101_v52, 8 }
  0xab   :  { %vm104_vm6 = vcmp.gt.s32.totalorder %v103_v29, 0 }
  0xac   :  { %v105_v31 = vsel %vm104_vm6, %v103_v29, 0 }
  0xad   :  { %v107_v32 = vand.u32 31, %v105_v31  ;;  %v106_v35 = vshrl.u32 %v105_v31, 5 }
  0xaf   :  { %v108_v33 = vsub.s32 32, %v107_v32  ;;  %v110_v37 = vshll.u32 %v317_v36, %v107_v32  ;;  %v113_v39 = vshll.u32 %v318_v38, %v107_v32  ;;  %v116_v43 = vshll.u32 %v319_v41, %v107_v32 }
  0xb0   :  { %v119_v46 = vshll.u32 %v320_v44, %v107_v32  ;;  %v122_v49 = vshll.u32 %v321_v47, %v107_v32  ;;  %vm125_vm7 = vcmp.lt.s32.totalorder %v106_v35, 1  ;;  %vm128_vm8 = vcmp.lt.s32.totalorder %v106_v35, 4 }
  0xb1   :  { %v111_v40 = vshrl.u32 %v318_v38, %v108_v33  ;;  %v114_v42 = vshrl.u32 %v319_v41, %v108_v33  ;;  %v117_v45 = vshrl.u32 %v320_v44, %v108_v33  ;;  %v120_v48 = vshrl.u32 %v321_v47, %v108_v33 }
  0xb2   :  { %v123_v51 = vshrl.u32 %v322_v50, %v108_v33  ;;  %v109_v61 = vshrl.u32 %v317_v36, %v108_v33  ;;  %vm127_vm9 = vcmp.lt.s32.totalorder %v106_v35, 3  ;;  %vm126_vm10 = vcmp.lt.s32.totalorder %v106_v35, 2 }
  0xb3   :  { %v112_v53 = vor.u32 %v111_v40, %v110_v37  ;;  %v115_v54 = vor.u32 %v114_v42, %v113_v39  ;;  %v118_v55 = vor.u32 %v117_v45, %v116_v43  ;;  %v121_v56 = vor.u32 %v120_v48, %v119_v46 }
  0xb4   :  { %v124_v57 = vor.u32 %v123_v51, %v122_v49 }
  0xb5   :  { %v130_v58 = vsel %vm128_vm8, %v118_v55, 2102212464  ;;  %v133_v59 = vsel %vm125_vm7, %v112_v53, %v115_v54  ;;  %v137_v60 = vsel %vm125_vm7, %v115_v54, %v118_v55  ;;  %v134_v62 = vsel %vm128_vm8, %v121_v56, 920167782 }
  0xb6   :  { %v138_v63 = vsel %vm128_vm8, %v124_v57, 1326507024  ;;  %v135_v0 = vsel %vm127_vm9, %v118_v55, %v134_v62  ;;  %v129_v3 = vsel %vm125_vm7, %v109_v61, %v112_v53  ;;  %v131_v4 = vsel %vm127_vm9, %v115_v54, %v130_v58 }
  0xb7   :  { %v139_v1 = vsel %vm127_vm9, %v121_v56, %v138_v63  ;;  %v136_v5 = vsel %vm126_vm10, %v133_v59, %v135_v0  ;;  %v132_v11 = vsel %vm126_vm10, %v129_v3, %v131_v4 }
  0xb8   :  { %v140_v6 = vsel %vm126_vm10, %v137_v60, %v139_v1  ;;  %v354_v9 = vmul.u32.u64.low %v141_v2, %v136_v5  ;;  %v355_v10 = vmul.u32.u64.high %v141_v2, %v136_v5, %v354_v9  ;;  %v148_v13 = vmul.u32 %v141_v2, %v132_v11 }
  0xb9   :  { %v351_v7 = vmul.u32.u64.low %v141_v2, %v140_v6  ;;  %v352_v8 = vmul.u32.u64.high %v141_v2, %v140_v6, %v351_v7 }
  0xba   :  { %v151_v12 = vadd.s32 1, %v355_v10 }
  0xbb   :  { %vm150_vm11 = vc.u32 %v352_v8, %v354_v9  ;;  %v149_v26 = vadd.s32 %v354_v9, %v352_v8 }
  0xbc   :  { %v152_v14 = vsel %vm150_vm11, %v151_v12, %v355_v10 }
  0xbd   :  { %v153_v15 = vadd.s32 %v152_v14, %v148_v13 }
  0xbf   :  { %v154_v16 = vadd.s32 536870912, %v153_v15 }
  0xc1   :  { %v155_v17 = vshrl.u32 %v154_v16, 30 }
  0xc3   :  { %v156_v18 = vshll.u32 %v155_v17, 30  ;;  %v179_v42 = vsub.s32 4, %v155_v17 }
  0xc5   :  { %v157_v19 = vsub.s32 %v153_v15, %v156_v18  ;;  %v180_v43 = vsel %vm95_vm13, %v179_v42, %v155_v17 }
  0xc6   :  { %v182_v44 = vsel %vm94_vm14, 0, %v180_v43 }
  0xc7   :  { %v159_v20 = vsub.s32 0, %v157_v19  ;;  %v186_v45 = vand.u32 3, %v182_v44 }
  0xc9   :  { %v216_v21 = vmin.u32 %v159_v20, %v157_v19  ;;  %vm191_vm15 = vcmp.eq.s32.totalorder %v186_v45, 2  ;;  %vm188_vm0 = vcmp.eq.s32.totalorder %v186_v45, 0  ;;  %vm187_vm1 = vcmp.lt.s32.totalorder %v186_v45, 2 }
  0xcb   :  { %v161_v22 = vclz %v216_v21 }
  0xcd   :  { %v217_v23 = vadd.s32 4294967294, %v161_v22 }
  0xcf   :  { %vm218_vm12 = vcmp.lt.s32.totalorder %v217_v23, 0 }
  0xd0   :  { %v164_v24 = vsel %vm218_vm12, 0, %v217_v23 }
  0xd1   :  { %v165_v27 = vsub.s32 32, %v164_v24  ;;  %v169_v28 = vsub.s32 4294967266, %v164_v24  ;;  %v166_v29 = vshll.u32 %v157_v19, %v164_v24 }
  0xd3   :  { %v167_v31 = vshrl.u32 %v149_v26, %v165_v27  ;;  %v170_v32 = vadd.s32 127, %v169_v28 }
  0xd5   :  { %v168_v33 = vor.u32 %v167_v31, %v166_v29  ;;  %v171_v34 = vshll.u32 %v170_v32, 23 }
  0xd7   :  { %v172_v35 = vor.u32 4788187, %v171_v34  ;;  %v175_v37 = vcvt.s32.f32 %v168_v33 }
  0xd9   :  { %v173_v36 = vand.u32 2147483647, %v172_v35 }
  0xdb   :  { %v176_v38 = vmul.f32 %v175_v37, %v173_v36 }
  0xdd   :  { %v177_v39 = vxor.u32 2147483648, %v176_v38 }
  0xdf   :  { %v178_v40 = vsel %vm95_vm13, %v177_v39, %v176_v38 }
  0xe0   :  { %v181_v41 = vsel %vm94_vm14, %v345_v25, %v178_v40 }
  0xe1   :  { %241 = vcosq.f32 %v181_v41 }
  0xe2   :  { %243 = vsinq.f32 %v181_v41 }
  0xee   :  { %v242_v46 = vpop.eup %241 }
  0xef   :  { %v244_v47 = vpop.eup %243  ;;  %v192_v48 = vxor.u32 2147483648, %v242_v46 }
  0xf0   :  { %v189_v49 = vxor.u32 2147483648, %v244_v47 }
  0xf1   :  { %v193_v50 = vsel %vm191_vm15, %v192_v48, %v244_v47 }
  0xf2   :  { %v190_v30 = vsel %vm188_vm0, %v242_v46, %v189_v49 }
  0xf3   :  { %v194_v51 = vsel %vm187_vm1, %v190_v30, %v193_v50 }
  0xf4   :  { %v195_v52 = vsel %vm185_vm2, nan, %v194_v51 }
  0xf5   :  { %196 = vst [vmem:[#allocation7] sm:$0xf] %v195_v52 }
  0xf6   :  { %296 = shalt.err (!%p293_p0)
}
  0xf7   :  { %206 = dma.vmem_to_hbm [thread:$0]  %s204_s1, 64, %s371_s2, [#allocation4]  }
  0xf8   :  { %309 = dma.done.wait [#allocation4], 64  }
  0xf9   :  { %310 = vsyncadd [#allocation4], 4294967232 }
  0xfa   :  { %210 = vsyncpa [#allocation3], 1 }
  0xfb   :  { %211 = vsyncpa [#allocation6], 1 }
  0xfc   :  { %212 = vsyncpa [#allocation4], 1 }

</bundles_post_ra>
